<compile_context>
chip_gen: v7x
topology: tpu7x:2x2x1
jax: 0.10.0
libtpu: 0.0.40
codegen_flags: <defaults>
</compile_context>

<pallas_src>
import functools
import math

import jax
import jax.numpy as jnp
import numpy as np
from jax.experimental import pallas as pl
from jax.experimental.pallas import tpu as pltpu


# ---------------------------------------------------------------------------
# Tunables (bytes). One block is double-buffered for both the input and the
# output stream, so ~4x the block size must fit in scoped VMEM.
# ---------------------------------------------------------------------------
_BLOCK_TARGET_BYTES = 4 * 1024 * 1024   # per-operand block target (~4 MiB)
_VMEM_BUDGET_BYTES = 24 * 1024 * 1024   # 4 x block must stay under this
_VMEM_LIMIT_BYTES = 32 * 1024 * 1024    # explicit scoped-VMEM limit


def _sublane(dtype) -> int:
    """Sublane multiple for the packed (sublane, 128) tile of this dtype."""
    itemsize = np.dtype(dtype).itemsize
    if itemsize >= 4:
        return 8
    if itemsize == 2:
        return 16
    return 32


@functools.lru_cache(maxsize=None)
def _roll_is_numpy_convention() -> bool:
    """One-time, cached probe of pltpu.roll's shift convention.

    Returns True if pltpu.roll(x, s, axis) == np.roll(x, s, axis), i.e.
    result[i] = x[(i - s) mod n]. The hot kernel then picks the shift that
    always yields the "next element" x[(i + 1) mod n]. Falls back to the
    documented np.roll convention if no TPU is available.
    """
    def _k(x_ref, o_ref):
        o_ref[...] = pltpu.roll(x_ref[...], shift=1, axis=1)

    try:
        x = jax.lax.broadcasted_iota(jnp.int32, (8, 128), 1)
        y = pl.pallas_call(
            _k, out_shape=jax.ShapeDtypeStruct((8, 128), jnp.int32)
        )(x)
        return int(jax.device_get(y)[0, 0]) == 127  # np.roll(iota, 1)[0] == 127
    except Exception:
        return True


def _b2mc_kernel(coef_ref, b_ref, mc_ref, *, shift):
    # Tile is (TR, W) in the input dtype. Cast to f32 in vregs only: HBM/VMEM
    # traffic stays at the input width (bf16 stays bf16); f32 VALU math also
    # works on v5e (no bf16 VPU there) and is free filler under the HBM stall.
    xf = b_ref[...].astype(jnp.float32)
    # Neighbour along the flattened coefficient order: nxt[r, c] = x[r, (c+1)%W]
    nxt = pltpu.roll(xf, shift=shift, axis=1)
    # coef is a resident (1, W) f32 row: alpha where (c % L) != L-1, else 0.
    # The zero also kills the wrap-around lane (c == W-1), since W % L == 0.
    mc_ref[...] = (xf + coef_ref[...] * nxt).astype(mc_ref.dtype)


def _b2mc_jnp(b, alpha):
    """Plain XLA fallback (tiny arrays / pathological L)."""
    shifted = jnp.concatenate(
        [b[..., 1:], jnp.zeros_like(b[..., -1:])], axis=-1)
    return (b + alpha * shifted).astype(b.dtype)


@functools.partial(jax.jit, static_argnames=("row_tile", "roll_like_numpy"))
def _b2mc_impl(b, alpha, *, row_tile, roll_like_numpy):
    orig_shape = b.shape
    dtype = b.dtype
    L = orig_shape[-1]                       # M + 1
    NL = math.prod(orig_shape)               # total element count (static)
    itemsize = np.dtype(dtype).itemsize
    sub = _sublane(dtype)

    # Lane-dense row width: multiple of 128 (unmasked full-width stores) and
    # multiple of L (the m -> m+1 neighbour never crosses a row, and the lane
    # position alone determines whether a lane is a "last coefficient").
    G = 128 // math.gcd(L, 128)
    W = L * G                                # lcm(L, 128)

    NR = pl.cdiv(NL, W)
    pad = NR * W - NL

    flat = b.reshape(-1)                     # free reshape (contiguous)
    if pad:
        # Ragged frame count: one tail pad pass on the input and one slice
        # pass on the output. allow_input_fusion below lets XLA fuse the pad
        # producer into the kernel operand where it can.
        # TODO(synk): zero-copy ragged path (1-D blocks / unaligned-width
        # rolls) not yet validated on Mosaic; see module docstring.
        flat = jnp.pad(flat, (0, pad))
    x2d = flat.reshape(NR, W)

    # ---- Row-tile selection --------------------------------------------
    # Target ~4 MiB per block, clamped so 4x block (in+out, double-buffered)
    # stays under the VMEM budget, rounded to the dtype sublane multiple.
    row_bytes = W * itemsize
    cap_budget = max(sub, (_VMEM_BUDGET_BYTES // (4 * row_bytes)) // sub * sub)
    if row_tile is None:
        cap = max(sub, (_BLOCK_TARGET_BYTES // row_bytes) // sub * sub)
    else:
        cap = max(sub, (int(row_tile) // sub) * sub)
    cap = min(cap, cap_budget)

    # Force a balanced multi-step grid when there is enough work, so both v7x
    # TensorCores get rows and the pipeline overlaps DMA with compute.
    nsteps = pl.cdiv(NR, cap)
    if NR >= 4 * sub:
        nsteps = max(nsteps, 4)
    elif NR >= 2 * sub:
        nsteps = max(nsteps, 2)

    if NR <= sub:
        TR = NR                               # single (possibly short) block
    else:
        TR = pl.cdiv(pl.cdiv(NR, nsteps), sub) * sub
        TR = min(NR, max(sub, min(TR, cap_budget)))
    grid = (pl.cdiv(NR, TR),)

    # Per-lane coefficient row (f32): alpha where the lane has a "next"
    # coefficient in the same frame, 0 on the last cepstral coefficient of
    # each length-L group. alpha stays a traced scalar -> no recompiles when
    # only alpha changes.
    has_next = np.asarray((np.arange(W) % L) != (L - 1)).reshape(1, W)
    coef = jnp.where(jnp.asarray(has_next),
                     jnp.asarray(alpha, jnp.float32),
                     jnp.float32(0.0))

    shift = (W - 1) if roll_like_numpy else 1

    mc2d = pl.pallas_call(
        functools.partial(_b2mc_kernel, shift=shift),
        out_shape=jax.ShapeDtypeStruct((NR, W), dtype),
        grid=grid,
        in_specs=[
            pl.BlockSpec((1, W), lambda i: (0, 0)),    # coef: tiny, resident
            pl.BlockSpec((TR, W), lambda i: (i, 0)),   # b row tile, lane-dense
        ],
        out_specs=pl.BlockSpec((TR, W), lambda i: (i, 0)),
        compiler_params=pltpu.CompilerParams(
            # "parallel" lets the row axis shard across TensorCores on
            # multi-core parts; on single-TC chips it is a no-op.
            dimension_semantics=("parallel",),
            vmem_limit_bytes=_VMEM_LIMIT_BYTES,
            # Let XLA fuse the (possible) pad producer into the b operand.
            allow_input_fusion=[False, True],
        ),
    )(coef, x2d)

    out = mc2d.reshape(-1)
    if pad:
        out = out[:NL]
    return out.reshape(orig_shape)


def b2mc(b: jax.Array, alpha, *, row_tile: int | None = None) -> jax.Array:
    """Convert MLSA filter coefficients b (..., M+1) to mel-cepstrum."""
    assert b.ndim >= 1
    if isinstance(alpha, (int, float)):
        assert abs(alpha) < 1
    L = b.shape[-1]
    if L <= 1 or b.size == 0:
        return jnp.asarray(b)          # A is the 1x1 identity / empty input

    # Guard: for very large odd L, W = lcm(L, 128) explodes and even the
    # minimum (sublane-rows x W) double-buffered blocks would not fit VMEM.
    sub = _sublane(b.dtype)
    itemsize = np.dtype(b.dtype).itemsize
    G = 128 // math.gcd(L, 128)
    W = L * G
    if 4 * sub * W * itemsize > _VMEM_BUDGET_BYTES:
        return _b2mc_jnp(jnp.asarray(b), float(alpha))

    return _b2mc_impl(
        b, jnp.float32(alpha),
        row_tile=row_tile,
        roll_like_numpy=_roll_is_numpy_convention(),
    )


class MLSADigitalFilterCoefficientsToMelCepstrum:
    """Mirror of the PyTorch module's interface."""

    def __init__(self, cep_order: int, alpha: float = 0.0):
        assert 0 <= cep_order
        assert abs(alpha) < 1
        self.cep_order = cep_order
        self.alpha = float(alpha)

    def __call__(self, b: jax.Array) -> jax.Array:
        assert b.shape[-1] == self.cep_order + 1
        return b2mc(b, self.alpha)


def _reference_b2mc(b, alpha):
    """Plain NumPy reference, identical to the torch module (mc = b @ A.T)."""
    L = b.shape[-1]
    A = np.eye(L)
    np.fill_diagonal(A[:, 1:], alpha)                 # A[i, i+1] = alpha
    return np.asarray(b).astype(np.float64) @ A.T


if __name__ == "__main__":
    cep_order = 4
    alpha = 0.3
    L = cep_order + 1

    key = jax.random.PRNGKey(0)
    k1, k2, k3, k4 = jax.random.split(key, 4)

    # 1) Small f32 case via the module-style wrapper.
    module = MLSADigitalFilterCoefficientsToMelCepstrum(cep_order, alpha)
    b1 = jax.random.normal(k1, (2, 8, L), dtype=jnp.float32)
    mc1 = jax.block_until_ready(module(b1))
    assert mc1.shape == b1.shape and mc1.dtype == b1.dtype
    np.testing.assert_allclose(
        np.asarray(mc1).astype(np.float64), _reference_b2mc(b1, alpha),
        rtol=1e-5, atol=1e-5)

    # 2) Ragged frame count (4*900 frames, not a multiple of 128) + negative
    #    alpha; row_tile=8 forces a multi-step grid with a partial last block.
    b2 = jax.random.normal(k2, (4, 900, L), dtype=jnp.float32)
    mc2 = jax.block_until_ready(b2mc(b2, -0.42, row_tile=8))
    np.testing.assert_allclose(
        np.asarray(mc2).astype(np.float64), _reference_b2mc(b2, -0.42),
        rtol=1e-5, atol=1e-5)

    # 3) bf16 I/O: HBM traffic stays bf16, add runs in f32 in vregs.
    b3 = jax.random.normal(k3, (2, 8, L), dtype=jnp.bfloat16)
    mc3 = jax.block_until_ready(b2mc(b3, alpha))
    assert mc3.dtype == jnp.bfloat16 and mc3.shape == b3.shape
    np.testing.assert_allclose(
        np.asarray(mc3).astype(np.float64), _reference_b2mc(b3, alpha),
        rtol=5e-2, atol=5e-2)

    # 4) Copy-free fast path: 8*1280 frames is a multiple of 128, default
    #    block sizing, balanced multi-step grid, different alpha.
    b4 = jax.random.normal(k4, (8, 1280, L), dtype=jnp.float32)
    mc4 = jax.block_until_ready(b2mc(b4, 0.1))
    np.testing.assert_allclose(
        np.asarray(mc4).astype(np.float64), _reference_b2mc(b4, 0.1),
        rtol=1e-5, atol=1e-5)

    print("KERNEL_OK")
</pallas_src>

<mosaic_0001>
module attributes {stable_mosaic.version = 11 : i64} {
  func.func @_k(%arg0: memref<8x128xi32, #tpu.memory_space<vmem>>, %arg1: memref<8x128xi32, #tpu.memory_space<vmem>>) attributes {dimension_semantics = [], scalar_prefetch = 0 : i64, scratch_operands = 0 : i64, tpu.core_type = #tpu.core_type<tc>} {
    %c0 = arith.constant 0 : index
    %c0_0 = arith.constant 0 : index
    %0 = vector.load %arg0[%c0, %c0_0] : memref<8x128xi32, #tpu.memory_space<vmem>>, vector<8x128xi32>
    %c1_i32 = arith.constant 1 : i32
    %1 = tpu.dynamic_rotate %0 by %c1_i32 dim 1 : vector<8x128xi32>, i32 -> vector<8x128xi32>
    %c0_1 = arith.constant 0 : index
    %c0_2 = arith.constant 0 : index
    %2 = vector.load %arg1[%c0_1, %c0_2] : memref<8x128xi32, #tpu.memory_space<vmem>>, vector<8x128xi32>
    tpu.vector_store %arg1[%c0_1, %c0_2], %1 {strides = array<i32>} : memref<8x128xi32, #tpu.memory_space<vmem>>, vector<8x128xi32>,
    return
  }
}

module attributes {stable_mosaic.version = 11 : i64} {
  func.func @_b2mc_kernel(%arg0: i32, %arg1: memref<1x640xf32, #tpu.memory_space<vmem>>, %arg2: memref<1x640xf32, #tpu.memory_space<vmem>>, %arg3: memref<1x640xf32, #tpu.memory_space<vmem>>) attributes {dimension_semantics = [#tpu.dimension_semantics<parallel>], iteration_bounds = array<i64: 1>, scalar_prefetch = 0 : i64, scratch_operands = 0 : i64, tpu.core_type = #tpu.core_type<tc>, window_params = [{pipeline_mode = #tpu.pipeline_mode<synchronous>, transform_indices = @transform_0, window_bounds = array<i64: 1, 640>}, {transform_indices = @transform_1, window_bounds = array<i64: 1, 640>}, {transform_indices = @transform_2, window_bounds = array<i64: 1, 640>}]} {
    %c0 = arith.constant 0 : index
    %c0_0 = arith.constant 0 : index
    %0 = vector.load %arg2[%c0, %c0_0] : memref<1x640xf32, #tpu.memory_space<vmem>>, vector<1x640xf32>
    %c639_i32 = arith.constant 639 : i32
    %1 = tpu.dynamic_rotate %0 by %c639_i32 dim 1 : vector<1x640xf32>, i32 -> vector<1x640xf32>
    %c0_1 = arith.constant 0 : index
    %c0_2 = arith.constant 0 : index
    %2 = vector.load %arg1[%c0_1, %c0_2] : memref<1x640xf32, #tpu.memory_space<vmem>>, vector<1x640xf32>
    %3 = arith.mulf %2, %1 : vector<1x640xf32>
    %4 = arith.addf %0, %3 : vector<1x640xf32>
    %c0_3 = arith.constant 0 : index
    %c0_4 = arith.constant 0 : index
    %5 = vector.load %arg3[%c0_3, %c0_4] : memref<1x640xf32, #tpu.memory_space<vmem>>, vector<1x640xf32>
    tpu.vector_store %arg3[%c0_3, %c0_4], %4 {strides = array<i32>} : memref<1x640xf32, #tpu.memory_space<vmem>>, vector<1x640xf32>,
    return
  }
  func.func @transform_0(%arg0: i32) -> (i32, i32) {
    %c0_i32 = arith.constant 0 : i32
    %c0_i32_0 = arith.constant 0 : i32
    %c0_i32_1 = arith.constant 0 : i32
    return %c0_i32, %c0_i32_0 : i32, i32
  }
  func.func @transform_1(%arg0: i32) -> (i32, i32) {
    %c0_i32 = arith.constant 0 : i32
    %c0_i32_0 = arith.constant 0 : i32
    return %arg0, %c0_i32 : i32, i32
  }
  func.func @transform_2(%arg0: i32) -> (i32, i32) {
    %c0_i32 = arith.constant 0 : i32
    %c0_i32_0 = arith.constant 0 : i32
    return %arg0, %c0_i32 : i32, i32
  }
}

</mosaic_0001>

<bundles_post_ra>
// kernel: tpu_custom_call.1
= control target key start
LH: loop header
LB: loop body
LE: loop exit
PB: predicated region body
PF: predicated region fallthrough
CT: control target
= control target key end

     0   :  { %6 = vsyncpa [#allocation3], 0  ;;  %s128_s0 = inlined_call_operand.hbm [shape: s32[8,128], index: 0, kind: input, shape index: {}]   ;;  %s129_s1 = inlined_call_operand.hbm [shape: s32[8,128], index: 1, kind: output, shape index: {}]  }
   0x1   :  { %7 = vsyncpa [#allocation4], 0  ;;  %s91_s6 = smov [#allocation2]   ;;  %s43_s10 = scalar_lea.hbm %s128_s0, 128 }
   0x2   :  { %s14_s7 = sshll.u32 %s91_s6, 4  ;;  %p44_p0 = scmp.ne.s32.totalorder %s128_s0, %s43_s10  ;;  %s15_s7 = int_to_ptr.vmem [resolvable:$true] %s14_s7 }
   0x3   :  { %p47_p1 = scmp.lt.u32.totalorder %s43_s10, %s128_s0 }
   0x5   :  { %p49_p2 = pnand %p47_p1, %p44_p0 }
   0x7   :  { %52 = shalt.err (!%p49_p2)
}
   0x8   :  { %s53_s15 = scalar_lea.vmem %s15_s7, 128  ;;  %p58_p4 = scmp.lt.s32.totalorder %s15_s7, %s15_s7 }
   0x9   :  { %p54_p3 = scmp.ne.s32.totalorder %s15_s7, %s53_s15  ;;  %p59_p5 = scmp.lt.s32.totalorder %s53_s15, %s53_s15 }
   0xb   :  { %p60_p6 = por %p59_p5, %p58_p4 }
   0xd   :  { %p61_p7 = pnand %p60_p6, %p54_p3 }
   0xf   :  { %64 = shalt.err (!%p61_p7)
}
  0x10   :  { %17 = dma.hbm_to_vmem [thread:$0]  %s128_s0, 128, %s15_s7, [#allocation3]  }
  0x11   :  { %87 = dma.done.wait [#allocation3], 128  }
  0x12   :  { %88 = vsyncadd [#allocation3], 4294967168  ;;  %v21_v0 = vld [vmem:[#allocation2] sm:$0xff]  ;;  %s92_s18 = smov 1   ;;  %s93_s19 = smov [#allocation5]  }
  0x13   :  { %22 = vrot.lane.b32.xlu0 %v21_v0, %s92_s18  ;;  %s31_s20 = sshll.u32 %s93_s19, 4  ;;  %s32_s20 = int_to_ptr.vmem [resolvable:$true] %s31_s20 }
  0x14   :  { %s65_s21 = scalar_lea.vmem %s32_s20, 128  ;;  %p70_p9 = scmp.lt.s32.totalorder %s32_s20, %s32_s20 }
  0x15   :  { %p66_p8 = scmp.ne.s32.totalorder %s32_s20, %s65_s21  ;;  %p71_p10 = scmp.lt.s32.totalorder %s65_s21, %s65_s21 }
  0x17   :  { %p72_p11 = por %p71_p10, %p70_p9 }
  0x19   :  { %p73_p12 = pnand %p72_p11, %p66_p8 }
  0x85   :  { %v23_v1 = vpop.permute.xlu0 %22 }
  0x86   :  { %24 = vst [vmem:[#allocation5] sm:$0xff] %v23_v1 }
  0x87   :  { %76 = shalt.err (!%p73_p12)
}
  0x88   :  { %s77_s0 = scalar_lea.hbm %s129_s1, 128 }
  0x89   :  { %p78_p13 = scmp.ne.s32.totalorder %s129_s1, %s77_s0  ;;  %p81_p0 = scmp.lt.u32.totalorder %s77_s0, %s129_s1 }
  0x8b   :  { %p83_p1 = pnand %p81_p0, %p78_p13 }
  0x8d   :  { %86 = shalt.err (!%p83_p1)
}
  0x8e   :  { %34 = dma.vmem_to_hbm [thread:$0]  %s32_s20, 128, %s129_s1, [#allocation4]  }
  0x8f   :  { %89 = dma.done.wait [#allocation4], 128  }
  0x90   :  { %90 = vsyncadd [#allocation4], 4294967168 }
  0x91   :  { %38 = vsyncpa [#allocation3], 1 }
  0x92   :  { %39 = vsyncpa [#allocation4], 1 }

// kernel: _b2mc_impl.2
= control target key start
LH: loop header
LB: loop body
LE: loop exit
PB: predicated region body
PF: predicated region fallthrough
CT: control target
= control target key end

     0   :  { %v36_v3 = vlaneseq  ;;  %s142_s19 = smov 127   ;;  %v143_v18 = vmov 1966171168   ;;  %s180_s0 = inlined_call_operand.vmem [shape: f32[1,640], index: 0, kind: input, shape index: {}]   ;;  %s181_s1 = inlined_call_operand.vmem [shape: f32[640], index: 1, kind: input, shape index: {}]   ;;  %s182_s2 = inlined_call_operand.vmem [shape: f32[1,640], index: 2, kind: output, shape index: {}]  }
   0x1   :  { %v11_v0 = vld [vmem:[%s181_s1] ss:$0 sm:$0xff]  ;;  %v136_v1 = vld [vmem:[%s181_s1 + $0x1] ss:$0 sm:$0xff]  ;;  %v137_v2 = vld [vmem:[%s181_s1 + $0x2] ss:$0 sm:$0xff]  ;;  %v88_v19 = vunpack.c.l.s4 %v143_v18 }
   0x2   :  { %13 = vst [vmem:[#allocation2] sm:$0x1] %v11_v0  ;;  %18 = vst [vmem:[#allocation2 + $0x1] sm:$0x1] %v136_v1  ;;  %v138_v4 = vld [vmem:[%s181_s1 + $0x3] ss:$0 sm:$0xff] }
   0x3   :  { %23 = vst [vmem:[#allocation2 + $0x2] sm:$0x1] %v137_v2  ;;  %v139_v5 = vld [vmem:[%s181_s1 + $0x4] ss:$0 sm:$0xff]  ;;  %28 = vst [vmem:[#allocation2 + $0x3] sm:$0x1] %v138_v4  ;;  %v89_v23 = vunpack.c.0.s8 %v88_v19 }
   0x4   :  { %33 = vst [vmem:[#allocation2 + $0x4] sm:$0x1] %v139_v5  ;;  %v37_v6 = vshrl.u32 %v36_v3, 7  ;;  %v72_v20 = vand.u32 127, %v36_v3  ;;  %v79_v41 = vld [vmem:[%s180_s0] sm:$0x1f] }
   0x5   :  { %vm129_vm1 = vcmp.lt.s32.totalorder %v36_v3, 640 }
   0x6   :  { %v46_v7 = vsub.s32 2, %v37_v6  ;;  %v38_v8 = vsub.s32 0, %v37_v6  ;;  %v50_v9 = vsub.s32 3, %v37_v6  ;;  %v42_v10 = vsub.s32 1, %v37_v6 }
   0x7   :  { %v54_v16 = vsub.s32 4, %v37_v6  ;;  %vm73_vm0 = vcmp.lt.s32.totalorder %v72_v20, 127  ;;  %v92_v24 = vsub.s32 %v89_v23, %v37_v6 }
   0xb   :  { %v34_v11 = vld [vmem:[#allocation2] sm:$0x1f] }
   0xc   :  { %v47_v12 = vrot.slane %v34_v11, %v46_v7  ;;  %v39_v13 = vrot.slane %v34_v11, %v38_v8  ;;  %v51_v14 = vrot.slane %v34_v11, %v50_v9  ;;  %v43_v15 = vrot.slane %v34_v11, %v42_v10 }
   0xd   :  { %v55_v17 = vrot.slane %v34_v11, %v54_v16 }
   0xe   :  { %65 = vrot.lane.b32.xlu1 %v47_v12, %s142_s19  ;;  %61 = vrot.lane.b32.xlu0 %v39_v13, %s142_s19 }
  0x12   :  { %67 = vrot.lane.b32.xlu1 %v51_v14, %s142_s19  ;;  %63 = vrot.lane.b32.xlu0 %v43_v15, %s142_s19 }
  0x16   :  { %69 = vrot.lane.b32.xlu0 %v55_v17, %s142_s19 }
  0x80   :  { %v66_v21 = vpop.permute.xlu1 %65  ;;  %v62_v22 = vpop.permute.xlu0 %61 }
  0x84   :  { %v64_v25 = vpop.permute.xlu0 %63  ;;  %v68_v28 = vpop.permute.xlu1 %67 }
  0x85   :  { %v76_v26 = vsel %vm73_vm0, %v64_v25, %v66_v21  ;;  %v77_v27 = vsel %vm73_vm0, %v62_v22, %v64_v25  ;;  %v75_v32 = vsel %vm73_vm0, %v66_v21, %v68_v28 }
  0x86   :  { %v85_v29 = vcombine.low %v77_v27, %v76_v26 }
  0x88   :  { %v93_v30 = vrot.slane %v85_v29, %v92_v24  ;;  %v70_v31 = vpop.permute.xlu0 %69 }
  0x89   :  { %v74_v33 = vsel %vm73_vm0, %v68_v28, %v70_v31  ;;  %v78_v34 = vsel %vm73_vm0, %v70_v31, %v62_v22 }
  0x8a   :  { %v86_v35 = vcombine.low %v75_v32, %v74_v33  ;;  %v107_v36 = vrot.slane %v78_v34, %v92_v24 }
  0x8c   :  { %v100_v37 = vrot.slane %v86_v35, %v92_v24  ;;  %v122_v38 = vrot.slane %v107_v36, %v92_v24 }
  0x8e   :  { %v108_v39 = vcombine.low %v93_v30, %v100_v37 }
  0x90   :  { %v115_v40 = vrot.slane %v108_v39, %v92_v24 }
  0x92   :  { %v123_v42 = vcombine.low %v115_v40, %v122_v38 }
  0x94   :  { %v125_v43 = vmul.f32 %v123_v42, %v79_v41 }
  0x96   :  { %v126_v44 = vadd.f32 %v125_v43, %v34_v11 }
  0x98   :  { %131 = vst.msk [vmem:[%s182_s2] sm:$0x1f] %vm129_vm1, %v126_v44 }

</bundles_post_ra>
